<compile_context>
chip_gen: v7x
topology: tpu7x:2x2x1
jax: 0.10.0
libtpu: 0.0.40
codegen_flags: <defaults>
</compile_context>

<pallas_src>
import math
from functools import partial

import jax
import jax.numpy as jnp
from jax.experimental import pallas as pl
from jax.experimental.pallas import tpu as pltpu

HIDDEN = 64
LOG_2PI = math.log(2.0 * math.pi)


def _round_up(x, m):
    return (x + m - 1) // m * m


# ----------------------------------------------------------------------------
# Kernel: one batch tile of the fused actor+critic evaluate.
# ----------------------------------------------------------------------------
def _fused_eval_kernel(state_ref, action_ref,
                       w1_ref, b1_ref, w2_ref, b2_ref, w3_ref, b3_ref,
                       neg_inv_two_var_ref, lp_const_ref,
                       out_ref):
    a_dim = action_ref.shape[1]

    x = state_ref[...]                                            # (tb, S)

    # fused layer 1: lanes [0,64) = actor, [64,128) = critic
    h1 = jnp.dot(x, w1_ref[...], preferred_element_type=jnp.float32) + b1_ref[...]
    h1 = jnp.maximum(h1, 0.0).astype(w2_ref.dtype)

    # fused layer 2: block-diagonal (128, 128) keeps the two towers separate
    h2 = jnp.dot(h1, w2_ref[...], preferred_element_type=jnp.float32) + b2_ref[...]
    h2 = jnp.maximum(h2, 0.0).astype(w3_ref.dtype)

    # fused head: lanes [0, A) = action_mean, lane A = state_value
    head = jnp.dot(h2, w3_ref[...], preferred_element_type=jnp.float32) + b3_ref[...]
    action_mean = head[:, :a_dim]                                 # (tb, A)
    state_value = head[:, a_dim:a_dim + 1]                        # (tb, 1)

    # Normal(action_mean, exp(log_std)).log_prob, divisions pre-folded:
    #   lp = -(x-mu)^2 * (0.5/var) - (log_std + 0.5*log(2*pi))
    diff = action_ref[...].astype(jnp.float32) - action_mean
    lp = diff * diff * neg_inv_two_var_ref[...] + lp_const_ref[...]
    logprob = jnp.sum(lp, axis=-1, keepdims=True)                 # (tb, 1)

    # single lane-packed store: lane 0 = logprob, lane 1 = value, rest 0
    lane = jax.lax.broadcasted_iota(jnp.int32, out_ref.shape, 1)
    out_ref[...] = jnp.where(lane == 0, logprob,
                             jnp.where(lane == 1, state_value, 0.0))


# ----------------------------------------------------------------------------
# Parameter fusion (wrapper-side layout plumbing, pure JAX)
# ----------------------------------------------------------------------------
def _fuse_params(params, compute_dtype):
    (aw1, ab1, aw2, ab2, aw3, ab3,
     cw1, cb1, cw2, cb2, cw3, cb3, log_std) = params
    H = HIDDEN
    A = aw3.shape[1]
    f32 = jnp.float32

    w1 = jnp.concatenate([aw1, cw1], axis=1)                      # (S, 2H)
    b1 = jnp.concatenate([ab1, cb1], axis=1).astype(f32)          # (1, 2H)
    w2 = (jnp.zeros((2 * H, 2 * H), f32)
          .at[:H, :H].set(aw2).at[H:, H:].set(cw2))               # (2H, 2H)
    b2 = jnp.concatenate([ab2, cb2], axis=1).astype(f32)          # (1, 2H)
    w3 = (jnp.zeros((2 * H, A + 1), f32)
          .at[:H, :A].set(aw3).at[H:, A:].set(cw3))               # (2H, A+1)
    b3 = jnp.concatenate([ab3, cb3], axis=1).astype(f32)          # (1, A+1)

    neg_inv_two_var = (-0.5 * jnp.exp(-2.0 * log_std)).astype(f32)    # (1, A)
    lp_const = (-(log_std + 0.5 * LOG_2PI)).astype(f32)               # (1, A)
    ent_scalar = jnp.sum(0.5 + 0.5 * LOG_2PI + log_std).astype(f32)   # ()

    cd = compute_dtype
    fused = (w1.astype(cd), b1, w2.astype(cd), b2, w3.astype(cd), b3,
             neg_inv_two_var, lp_const)
    return fused, ent_scalar


# ----------------------------------------------------------------------------
# Wrapper: grid over batch tiles, weights resident, lane-packed output.
# ----------------------------------------------------------------------------
@partial(jax.jit, static_argnames=("block_b", "compute_dtype"))
def actor_critic_evaluate(state, action, params, *, block_b=512,
                          compute_dtype=jnp.float32):
    B, S = state.shape
    A = action.shape[1]

    (w1, b1, w2, b2, w3, b3, neg_itv, lpc), ent_scalar = _fuse_params(
        params, compute_dtype)

    # Batch tile: multiple of 8 sublanes; block_b=512 fits easily in VMEM even
    # on v7x (64 MiB total / 32 MiB scoped default) with double buffering.
    tb = min(block_b, _round_up(B, 8))
    Bp = _round_up(B, tb)

    state_p = state.astype(compute_dtype)
    action_p = action.astype(compute_dtype)
    if Bp != B:
        state_p = jnp.pad(state_p, ((0, Bp - B), (0, 0)))
        action_p = jnp.pad(action_p, ((0, Bp - B), (0, 0)))

    def resident(arr):
        # full-array block, constant block index -> stays VMEM-resident across
        # all grid steps (DMA'd once).
        return pl.BlockSpec(arr.shape, lambda i: (0, 0))

    packed = pl.pallas_call(
        _fused_eval_kernel,
        out_shape=jax.ShapeDtypeStruct((Bp, 8), jnp.float32),
        grid=(Bp // tb,),
        in_specs=[
            pl.BlockSpec((tb, S), lambda i: (i, 0)),    # state  (streamed)
            pl.BlockSpec((tb, A), lambda i: (i, 0)),    # action (streamed)
            resident(w1), resident(b1),
            resident(w2), resident(b2),
            resident(w3), resident(b3),
            resident(neg_itv), resident(lpc),
        ],
        out_specs=pl.BlockSpec((tb, 8), lambda i: (i, 0)),
        compiler_params=pltpu.CompilerParams(
            dimension_semantics=("parallel",),
        ),
    )(state_p, action_p, w1, b1, w2, b2, w3, b3, neg_itv, lpc)

    # TODO(synk): if profiling shows the batch-tile DMA still exposed, add
    # pipeline_mode=pl.Buffered(3) on the state/action BlockSpecs.

    logprob = packed[:B, 0]                    # (B,)
    value = packed[:B, 1:2]                    # (B, 1)
    entropy = jnp.broadcast_to(ent_scalar, (B,))   # batch-independent scalar
    return logprob, value, entropy


# ----------------------------------------------------------------------------
# Params / reference
# ----------------------------------------------------------------------------
def init_params(key, state_dim, action_dim, dtype=jnp.float32):
    """Deterministic synthetic params. Linear weights stored as (in, out)."""
    keys = jax.random.split(key, 12)

    def lin(kw, kb, fan_in, fan_out):
        bound = 1.0 / math.sqrt(fan_in)
        w = jax.random.uniform(kw, (fan_in, fan_out), dtype, -bound, bound)
        b = jax.random.uniform(kb, (1, fan_out), dtype, -bound, bound)
        return w, b

    aw1, ab1 = lin(keys[0], keys[1], state_dim, HIDDEN)
    aw2, ab2 = lin(keys[2], keys[3], HIDDEN, HIDDEN)
    aw3, ab3 = lin(keys[4], keys[5], HIDDEN, action_dim)
    cw1, cb1 = lin(keys[6], keys[7], state_dim, HIDDEN)
    cw2, cb2 = lin(keys[8], keys[9], HIDDEN, HIDDEN)
    cw3, cb3 = lin(keys[10], keys[11], HIDDEN, 1)
    log_std = jnp.zeros((1, action_dim), dtype)   # nn.Parameter(torch.zeros(1, A))
    return (aw1, ab1, aw2, ab2, aw3, ab3, cw1, cb1, cw2, cb2, cw3, cb3, log_std)


def reference_evaluate(state, action, params):
    (aw1, ab1, aw2, ab2, aw3, ab3, cw1, cb1, cw2, cb2, cw3, cb3, log_std) = params
    h = jnp.maximum(state @ aw1 + ab1, 0.0)
    h = jnp.maximum(h @ aw2 + ab2, 0.0)
    mean = h @ aw3 + ab3
    c = jnp.maximum(state @ cw1 + cb1, 0.0)
    c = jnp.maximum(c @ cw2 + cb2, 0.0)
    value = c @ cw3 + cb3
    std = jnp.exp(log_std)
    lp = -((action - mean) ** 2) / (2 * std * std) - log_std - 0.5 * LOG_2PI
    ent = 0.5 + 0.5 * LOG_2PI + log_std
    return lp.sum(-1), value, jnp.broadcast_to(ent.sum(-1), (state.shape[0],))


# TODO(synk): act() uses torch.distributions.Normal.sample (stochastic); the
# sampling path is not part of the deterministic hot path and is left out.

if __name__ == "__main__":
    state_dim, action_dim = 16, 4
    key = jax.random.PRNGKey(0)
    k_params, k_data = jax.random.split(key)
    params = init_params(k_params, state_dim, action_dim)

    # f32 path: small batch (single tile) and a non-multiple batch (grid=2 + padding)
    for batch in (8, 1000):
        ks, ka = jax.random.split(jax.random.fold_in(k_data, batch))
        state = jax.random.normal(ks, (batch, state_dim), jnp.float32)
        action = jax.random.normal(ka, (batch, action_dim), jnp.float32)

        logprob, value, entropy = actor_critic_evaluate(state, action, params)
        jax.block_until_ready((logprob, value, entropy))

        lp_ref, val_ref, ent_ref = reference_evaluate(state, action, params)
        assert logprob.shape == (batch,) and value.shape == (batch, 1) and entropy.shape == (batch,)
        assert jnp.allclose(logprob, lp_ref, atol=2e-4, rtol=2e-4)
        assert jnp.allclose(value, val_ref, atol=2e-4, rtol=2e-4)
        assert jnp.allclose(entropy, ent_ref, atol=2e-4, rtol=2e-4)

    # bf16 compute-dtype path (v6e/v7x bandwidth optimization): just verify it
    # compiles, runs, and produces finite values.
    lp16, val16, ent16 = actor_critic_evaluate(
        state, action, params, compute_dtype=jnp.bfloat16)
    jax.block_until_ready((lp16, val16, ent16))
    assert bool(jnp.all(jnp.isfinite(lp16)))
    assert bool(jnp.all(jnp.isfinite(val16)))
    assert bool(jnp.all(jnp.isfinite(ent16)))

    print("KERNEL_OK")
</pallas_src>

<mosaic_0001>
module attributes {stable_mosaic.version = 11 : i64} {
  func.func @_fused_eval_kernel(%arg0: i32, %arg1: memref<8x16xf32, #tpu.memory_space<vmem>>, %arg2: memref<8x4xf32, #tpu.memory_space<vmem>>, %arg3: memref<16x128xf32, #tpu.memory_space<vmem>>, %arg4: memref<1x128xf32, #tpu.memory_space<vmem>>, %arg5: memref<128x128xf32, #tpu.memory_space<vmem>>, %arg6: memref<1x128xf32, #tpu.memory_space<vmem>>, %arg7: memref<128x5xf32, #tpu.memory_space<vmem>>, %arg8: memref<1x5xf32, #tpu.memory_space<vmem>>, %arg9: memref<1x4xf32, #tpu.memory_space<vmem>>, %arg10: memref<1x4xf32, #tpu.memory_space<vmem>>, %arg11: memref<8x8xf32, #tpu.memory_space<vmem>>) attributes {dimension_semantics = [#tpu.dimension_semantics<parallel>], iteration_bounds = array<i64: 1>, scalar_prefetch = 0 : i64, scratch_operands = 0 : i64, tpu.core_type = #tpu.core_type<tc>, window_params = [{transform_indices = @transform_0, window_bounds = array<i64: 8, 16>}, {transform_indices = @transform_1, window_bounds = array<i64: 8, 4>}, {pipeline_mode = #tpu.pipeline_mode<synchronous>, transform_indices = @transform_2, window_bounds = array<i64: 16, 128>}, {pipeline_mode = #tpu.pipeline_mode<synchronous>, transform_indices = @transform_3, window_bounds = array<i64: 1, 128>}, {pipeline_mode = #tpu.pipeline_mode<synchronous>, transform_indices = @transform_4, window_bounds = array<i64: 128, 128>}, {pipeline_mode = #tpu.pipeline_mode<synchronous>, transform_indices = @transform_5, window_bounds = array<i64: 1, 128>}, {pipeline_mode = #tpu.pipeline_mode<synchronous>, transform_indices = @transform_6, window_bounds = array<i64: 128, 5>}, {pipeline_mode = #tpu.pipeline_mode<synchronous>, transform_indices = @transform_7, window_bounds = array<i64: 1, 5>}, {pipeline_mode = #tpu.pipeline_mode<synchronous>, transform_indices = @transform_8, window_bounds = array<i64: 1, 4>}, {pipeline_mode = #tpu.pipeline_mode<synchronous>, transform_indices = @transform_9, window_bounds = array<i64: 1, 4>}, {transform_indices = @transform_10, window_bounds = array<i64: 8, 8>}]} {
    %c0 = arith.constant 0 : index
    %c0_0 = arith.constant 0 : index
    %0 = vector.load %arg1[%c0, %c0_0] : memref<8x16xf32, #tpu.memory_space<vmem>>, vector<8x16xf32>
    %c0_1 = arith.constant 0 : index
    %c0_2 = arith.constant 0 : index
    %1 = vector.load %arg3[%c0_1, %c0_2] : memref<16x128xf32, #tpu.memory_space<vmem>>, vector<16x128xf32>
    %cst = arith.constant dense<0.000000e+00> : vector<8x128xf32>
    %2 = tpu.matmul %0, %1, %cst {dimension_numbers = #tpu.dot_dimension_numbers<[1], [0], [0], [1], [0, 0, 1, 1], [], []>} : vector<8x16xf32>, vector<16x128xf32>, vector<8x128xf32> -> vector<8x128xf32>
    %c0_3 = arith.constant 0 : index
    %c0_4 = arith.constant 0 : index
    %3 = vector.load %arg4[%c0_3, %c0_4] : memref<1x128xf32, #tpu.memory_space<vmem>>, vector<1x128xf32>
    %4 = vector.broadcast %3 : vector<1x128xf32> to vector<8x128xf32>
    %5 = arith.addf %2, %4 : vector<8x128xf32>
    %cst_5 = arith.constant 0.000000e+00 : f32
    %6 = vector.broadcast %cst_5 : f32 to vector<8x128xf32>
    %7 = arith.maximumf %5, %6 : vector<8x128xf32>
    %c0_6 = arith.constant 0 : index
    %c0_7 = arith.constant 0 : index
    %8 = vector.load %arg5[%c0_6, %c0_7] : memref<128x128xf32, #tpu.memory_space<vmem>>, vector<128x128xf32>
    %cst_8 = arith.constant dense<0.000000e+00> : vector<8x128xf32>
    %9 = tpu.matmul %7, %8, %cst_8 {dimension_numbers = #tpu.dot_dimension_numbers<[1], [0], [0], [1], [0, 0, 1, 1], [], []>} : vector<8x128xf32>, vector<128x128xf32>, vector<8x128xf32> -> vector<8x128xf32>
    %c0_9 = arith.constant 0 : index
    %c0_10 = arith.constant 0 : index
    %10 = vector.load %arg6[%c0_9, %c0_10] : memref<1x128xf32, #tpu.memory_space<vmem>>, vector<1x128xf32>
    %11 = vector.broadcast %10 : vector<1x128xf32> to vector<8x128xf32>
    %12 = arith.addf %9, %11 : vector<8x128xf32>
    %cst_11 = arith.constant 0.000000e+00 : f32
    %13 = vector.broadcast %cst_11 : f32 to vector<8x128xf32>
    %14 = arith.maximumf %12, %13 : vector<8x128xf32>
    %c0_12 = arith.constant 0 : index
    %c0_13 = arith.constant 0 : index
    %15 = vector.load %arg7[%c0_12, %c0_13] : memref<128x5xf32, #tpu.memory_space<vmem>>, vector<128x5xf32>
    %cst_14 = arith.constant dense<0.000000e+00> : vector<8x5xf32>
    %16 = tpu.matmul %14, %15, %cst_14 {dimension_numbers = #tpu.dot_dimension_numbers<[1], [0], [0], [1], [0, 0, 1, 1], [], []>} : vector<8x128xf32>, vector<128x5xf32>, vector<8x5xf32> -> vector<8x5xf32>
    %c0_15 = arith.constant 0 : index
    %c0_16 = arith.constant 0 : index
    %17 = vector.load %arg8[%c0_15, %c0_16] : memref<1x5xf32, #tpu.memory_space<vmem>>, vector<1x5xf32>
    %18 = vector.broadcast %17 : vector<1x5xf32> to vector<8x5xf32>
    %19 = arith.addf %16, %18 : vector<8x5xf32>
    %20 = vector.extract_strided_slice %19 {offsets = [0, 0], sizes = [8, 4], strides = [1, 1]} : vector<8x5xf32> to vector<8x4xf32>
    %21 = vector.extract_strided_slice %19 {offsets = [0, 4], sizes = [8, 1], strides = [1, 1]} : vector<8x5xf32> to vector<8x1xf32>
    %c0_17 = arith.constant 0 : index
    %c0_18 = arith.constant 0 : index
    %22 = vector.load %arg2[%c0_17, %c0_18] : memref<8x4xf32, #tpu.memory_space<vmem>>, vector<8x4xf32>
    %23 = arith.subf %22, %20 : vector<8x4xf32>
    %24 = arith.mulf %23, %23 : vector<8x4xf32>
    %c0_19 = arith.constant 0 : index
    %c0_20 = arith.constant 0 : index
    %25 = vector.load %arg9[%c0_19, %c0_20] : memref<1x4xf32, #tpu.memory_space<vmem>>, vector<1x4xf32>
    %26 = vector.broadcast %25 : vector<1x4xf32> to vector<8x4xf32>
    %27 = arith.mulf %24, %26 : vector<8x4xf32>
    %c0_21 = arith.constant 0 : index
    %c0_22 = arith.constant 0 : index
    %28 = vector.load %arg10[%c0_21, %c0_22] : memref<1x4xf32, #tpu.memory_space<vmem>>, vector<1x4xf32>
    %29 = vector.broadcast %28 : vector<1x4xf32> to vector<8x4xf32>
    %30 = arith.addf %27, %29 : vector<8x4xf32>
    %cst_23 = arith.constant dense<0.000000e+00> : vector<8xf32>
    %31 = vector.multi_reduction <add>, %30, %cst_23 [1] : vector<8x4xf32> to vector<8xf32>
    %32 = vector.shape_cast %31 : vector<8xf32> to vector<8x1xf32>
    %33 = tpu.iota {dimensions = array<i32: 1>} : vector<8x8xi32>
    %c0_i32 = arith.constant 0 : i32
    %34 = vector.broadcast %c0_i32 : i32 to vector<8x8xi32>
    %35 = arith.cmpi eq, %33, %34 : vector<8x8xi32>
    %c1_i32 = arith.constant 1 : i32
    %36 = vector.broadcast %c1_i32 : i32 to vector<8x8xi32>
    %37 = arith.cmpi eq, %33, %36 : vector<8x8xi32>
    %cst_24 = arith.constant 0.000000e+00 : f32
    %38 = vector.shape_cast %21 : vector<8x1xf32> to vector<8x1xf32>
    %39 = vector.broadcast %38 : vector<8x1xf32> to vector<8x8xf32>
    %40 = vector.broadcast %cst_24 : f32 to vector<8x8xf32>
    %41 = arith.select %37, %39, %40 : vector<8x8xi1>, vector<8x8xf32>
    %42 = vector.shape_cast %32 : vector<8x1xf32> to vector<8x1xf32>
    %43 = vector.broadcast %42 : vector<8x1xf32> to vector<8x8xf32>
    %44 = arith.select %35, %43, %41 : vector<8x8xi1>, vector<8x8xf32>
    %c0_25 = arith.constant 0 : index
    %c0_26 = arith.constant 0 : index
    %45 = vector.load %arg11[%c0_25, %c0_26] : memref<8x8xf32, #tpu.memory_space<vmem>>, vector<8x8xf32>
    tpu.vector_store %arg11[%c0_25, %c0_26], %44 {strides = array<i32>} : memref<8x8xf32, #tpu.memory_space<vmem>>, vector<8x8xf32>,
    return
  }
  func.func @transform_0(%arg0: i32) -> (i32, i32) {
    %c0_i32 = arith.constant 0 : i32
    %c0_i32_0 = arith.constant 0 : i32
    return %arg0, %c0_i32 : i32, i32
  }
  func.func @transform_1(%arg0: i32) -> (i32, i32) {
    %c0_i32 = arith.constant 0 : i32
    %c0_i32_0 = arith.constant 0 : i32
    return %arg0, %c0_i32 : i32, i32
  }
  func.func @transform_2(%arg0: i32) -> (i32, i32) {
    %c0_i32 = arith.constant 0 : i32
    %c0_i32_0 = arith.constant 0 : i32
    %c0_i32_1 = arith.constant 0 : i32
    return %c0_i32, %c0_i32_0 : i32, i32
  }
  func.func @transform_3(%arg0: i32) -> (i32, i32) {
    %c0_i32 = arith.constant 0 : i32
    %c0_i32_0 = arith.constant 0 : i32
    %c0_i32_1 = arith.constant 0 : i32
    return %c0_i32, %c0_i32_0 : i32, i32
  }
  func.func @transform_4(%arg0: i32) -> (i32, i32) {
    %c0_i32 = arith.constant 0 : i32
    %c0_i32_0 = arith.constant 0 : i32
    %c0_i32_1 = arith.constant 0 : i32
    return %c0_i32, %c0_i32_0 : i32, i32
  }
  func.func @transform_5(%arg0: i32) -> (i32, i32) {
    %c0_i32 = arith.constant 0 : i32
    %c0_i32_0 = arith.constant 0 : i32
    %c0_i32_1 = arith.constant 0 : i32
    return %c0_i32, %c0_i32_0 : i32, i32
  }
  func.func @transform_6(%arg0: i32) -> (i32, i32) {
    %c0_i32 = arith.constant 0 : i32
    %c0_i32_0 = arith.constant 0 : i32
    %c0_i32_1 = arith.constant 0 : i32
    return %c0_i32, %c0_i32_0 : i32, i32
  }
  func.func @transform_7(%arg0: i32) -> (i32, i32) {
    %c0_i32 = arith.constant 0 : i32
    %c0_i32_0 = arith.constant 0 : i32
    %c0_i32_1 = arith.constant 0 : i32
    return %c0_i32, %c0_i32_0 : i32, i32
  }
  func.func @transform_8(%arg0: i32) -> (i32, i32) {
    %c0_i32 = arith.constant 0 : i32
    %c0_i32_0 = arith.constant 0 : i32
    %c0_i32_1 = arith.constant 0 : i32
    return %c0_i32, %c0_i32_0 : i32, i32
  }
  func.func @transform_9(%arg0: i32) -> (i32, i32) {
    %c0_i32 = arith.constant 0 : i32
    %c0_i32_0 = arith.constant 0 : i32
    %c0_i32_1 = arith.constant 0 : i32
    return %c0_i32, %c0_i32_0 : i32, i32
  }
  func.func @transform_10(%arg0: i32) -> (i32, i32) {
    %c0_i32 = arith.constant 0 : i32
    %c0_i32_0 = arith.constant 0 : i32
    return %arg0, %c0_i32 : i32, i32
  }
}

</mosaic_0001>

<bundles_post_ra>
// kernel: actor_critic_evaluate.1
= control target key start
LH: loop header
LB: loop body
LE: loop exit
PB: predicated region body
PF: predicated region fallthrough
CT: control target
= control target key end

     0   :  { %v523_v0 = vmov 0.0|0.0   ;;  %vm524_vm0 = vmmov 0   ;;  %v525_v3 = vmov 0.0   ;;  %vm45_vm1 = vcmask 130048   ;;  %s728_s2 = inlined_call_operand.vmem [shape: f32[16,128], index: 2, kind: input, shape index: {}]   ;;  %s729_s4 = inlined_call_operand.vmem [shape: f32[128,128], index: 4, kind: input, shape index: {}]   ;;  %s730_s0 = inlined_call_operand.vmem [shape: f32[8,16], index: 0, kind: input, shape index: {}]   ;;  %s731_s6 = inlined_call_operand.vmem [shape: f32[128,5], index: 6, kind: input, shape index: {}]   ;;  %s732_s3 = inlined_call_operand.vmem [shape: f32[1,128], index: 3, kind: input, shape index: {}]   ;;  %s733_s5 = inlined_call_operand.vmem [shape: f32[1,128], index: 5, kind: input, shape index: {}]   ;;  %s734_s7 = inlined_call_operand.vmem [shape: f32[1,5], index: 7, kind: input, shape index: {}]   ;;  %s735_s1 = inlined_call_operand.vmem [shape: f32[8,4], index: 1, kind: input, shape index: {}]   ;;  %s736_s8 = inlined_call_operand.vmem [shape: f32[1,4], index: 8, kind: input, shape index: {}]   ;;  %s737_s9 = inlined_call_operand.vmem [shape: f32[1,4], index: 9, kind: input, shape index: {}]   ;;  %s738_s10 = inlined_call_operand.vmem [shape: f32[8,8], index: 10, kind: output, shape index: {}]  }
   0x1   :  { %467 = vmatprep.subr.bf16.mxu0 %v523_v0  ;;  %v36_v1 = vld [vmem:[%s728_s2] sm:$0xff]  ;;  %v37_v2 = vld [vmem:[%s728_s2 + $0x8] sm:$0xff]  ;;  %394 = vmatprep.mubr.msk.f32.mxu0 %vm524_vm0, %v525_v3  ;;  %v122_v7 = vld [vmem:[%s729_s4 + $0x10] sm:$0xff]  ;;  %vm326_vm2 = vcmask 31744   ;;  %vm341_vm5 = vcmask 64512  }
   0x2   :  { %v468_v4 = vpack.c.bf16 %v37_v2, %v36_v1  ;;  %470 = vmatprep.subr.bf16.mxu1 %v523_v0  ;;  %v120_v5 = vld [vmem:[%s729_s4] sm:$0xff]  ;;  %v121_v6 = vld [vmem:[%s729_s4 + $0x8] sm:$0xff]  ;;  %429 = vmatprep.mubr.msk.f32.mxu1 %vm524_vm0, %v525_v3  ;;  %v123_v9 = vld [vmem:[%s729_s4 + $0x18] sm:$0xff] }
   0x3   :  { %v471_v8 = vpack.c.bf16 %v121_v6, %v120_v5  ;;  %v35_v10 = vld [vmem:[%s730_s0] sm:$0xff]  ;;  %v474_v11 = vpack.c.bf16 %v123_v9, %v122_v7  ;;  %v125_v13 = vld [vmem:[%s729_s4 + $0x28] sm:$0xff]  ;;  %v126_v15 = vld [vmem:[%s729_s4 + $0x30] sm:$0xff] }
   0x4   :  { %469 = vmatpush3.bf16.msra.mxu0 %v468_v4  ;;  %v124_v12 = vld [vmem:[%s729_s4 + $0x20] sm:$0xff]  ;;  %v127_v16 = vld [vmem:[%s729_s4 + $0x38] sm:$0xff]  ;;  %v129_v19 = vld [vmem:[%s729_s4 + $0x48] sm:$0xff] }
   0x5   :  { %472 = vmatpush3.bf16.msra.mxu1 %v471_v8  ;;  %494 = vmatprep.subr.bf16.mxu0 %v523_v0  ;;  %v477_v14 = vpack.c.bf16 %v125_v13, %v124_v12  ;;  %v480_v17 = vpack.c.bf16 %v127_v16, %v126_v15  ;;  %v128_v18 = vld [vmem:[%s729_s4 + $0x40] sm:$0xff]  ;;  %v130_v21 = vld [vmem:[%s729_s4 + $0x50] sm:$0xff]  ;;  %v131_v22 = vld [vmem:[%s729_s4 + $0x58] sm:$0xff]  ;;  %v330_v13 = vlaneseq }
   0x6   :  { %473 = vmatprep.subr.bf16.mxu1 %v523_v0  ;;  %v483_v20 = vpack.c.bf16 %v129_v19, %v128_v18  ;;  %v486_v23 = vpack.c.bf16 %v131_v22, %v130_v21  ;;  %v132_v24 = vld [vmem:[%s729_s4 + $0x60] sm:$0xff]  ;;  %v133_v25 = vld [vmem:[%s729_s4 + $0x68] sm:$0xff]  ;;  %v134_v27 = vld [vmem:[%s729_s4 + $0x70] sm:$0xff] }
   0x7   :  { %395 = vmatmul.mubr.msk.f32.vlgmr.msra.gmra.mrb[0].mxu0 %vm45_vm1, %v35_v10  ;;  %v489_v26 = vpack.c.bf16 %v133_v25, %v132_v24  ;;  %v135_v28 = vld [vmem:[%s729_s4 + $0x78] sm:$0xff]  ;;  %v214_v30 = vld [vmem:[%s731_s6] sm:$0xff]  ;;  %v215_v31 = vld [vmem:[%s731_s6 + $0x8] sm:$0xff] }
   0x8   :  { %464 = vmatprep.mubr.msk.f32.mxu0 %vm524_vm0, %v525_v3  ;;  %v492_v29 = vpack.c.bf16 %v135_v28, %v134_v27  ;;  %v216_v32 = vld [vmem:[%s731_s6 + $0x10] sm:$0xff]  ;;  %v495_v33 = vpack.c.bf16 %v215_v31, %v214_v30  ;;  %v217_v34 = vld [vmem:[%s731_s6 + $0x18] sm:$0xff]  ;;  %v218_v36 = vld [vmem:[%s731_s6 + $0x20] sm:$0xff] }
   0x9   :  { %475 = vmatpush3.bf16.msra.mxu1 %v474_v11  ;;  %v498_v35 = vpack.c.bf16 %v217_v34, %v216_v32  ;;  %v219_v37 = vld [vmem:[%s731_s6 + $0x28] sm:$0xff]  ;;  %v220_v39 = vld [vmem:[%s731_s6 + $0x30] sm:$0xff]  ;;  %v221_v40 = vld [vmem:[%s731_s6 + $0x38] sm:$0xff] }
   0xa   :  { %476 = vmatprep.subr.bf16.mxu1 %v523_v0  ;;  %496 = vmatpush3.bf16.msra.mxu0 %v495_v33  ;;  %v501_v38 = vpack.c.bf16 %v219_v37, %v218_v36  ;;  %v504_v41 = vpack.c.bf16 %v221_v40, %v220_v39  ;;  %v222_v42 = vld [vmem:[%s731_s6 + $0x40] sm:$0xff]  ;;  %v223_v43 = vld [vmem:[%s731_s6 + $0x48] sm:$0xff]  ;;  %v224_v45 = vld [vmem:[%s731_s6 + $0x50] sm:$0xff] }
   0xb   :  { %497 = vmatprep.subr.bf16.mxu0 %v523_v0  ;;  %v507_v44 = vpack.c.bf16 %v223_v43, %v222_v42  ;;  %v225_v46 = vld [vmem:[%s731_s6 + $0x58] sm:$0xff]  ;;  %v226_v48 = vld [vmem:[%s731_s6 + $0x60] sm:$0xff]  ;;  %v227_v49 = vld [vmem:[%s731_s6 + $0x68] sm:$0xff] }
   0xc   :  { %v510_v47 = vpack.c.bf16 %v225_v46, %v224_v45  ;;  %v513_v50 = vpack.c.bf16 %v227_v49, %v226_v48  ;;  %v347_v51 = vld [vmem:[%s732_s3] ss:$0 sm:$0xff]  ;;  %v228_v56 = vld [vmem:[%s731_s6 + $0x70] sm:$0xff]  ;;  %v229_v57 = vld [vmem:[%s731_s6 + $0x78] sm:$0xff] }
   0xd   :  { %478 = vmatpush3.bf16.msra.mxu1 %v477_v14  ;;  %v516_v58 = vpack.c.bf16 %v229_v57, %v228_v56  ;;  %v349_v59 = vld [vmem:[%s733_s5] ss:$0 sm:$0xff]  ;;  %v331_v14 = vand.u32 127, %v330_v13 }
   0xe   :  { %479 = vmatprep.subr.bf16.mxu1 %v523_v0  ;;  %499 = vmatpush3.bf16.msra.mxu0 %v498_v35  ;;  %v350_v1 = vld [vmem:[%s734_s7] ss:$0 sm:$0xff] }
   0xf   :  { %500 = vmatprep.subr.bf16.mxu0 %v523_v0  ;;  %v307_v3 = vld [vmem:[%s735_s1] sm:$0xff]  ;;  %vm333_vm3 = vcmp.eq.s32.totalorder %v331_v14, 1  ;;  %vm332_vm4 = vcmp.eq.s32.totalorder %v331_v14, 0 }
  0x10   :  { %v351_v7 = vld [vmem:[%s736_s8] ss:$0 sm:$0xff] }
  0x11   :  { %481 = vmatpush3.bf16.msra.mxu1 %v480_v17  ;;  %v352_v9 = vld [vmem:[%s737_s9] ss:$0 sm:$0xff] }
  0x12   :  { %482 = vmatprep.subr.bf16.mxu1 %v523_v0  ;;  %502 = vmatpush3.bf16.msra.mxu0 %v501_v38 }
  0x13   :  { %503 = vmatprep.subr.bf16.mxu0 %v523_v0 }
  0x15   :  { %484 = vmatpush3.bf16.msra.mxu1 %v483_v20 }
  0x16   :  { %485 = vmatprep.subr.bf16.mxu1 %v523_v0  ;;  %505 = vmatpush3.bf16.msra.mxu0 %v504_v41 }
  0x17   :  { %506 = vmatprep.subr.bf16.mxu0 %v523_v0 }
  0x19   :  { %487 = vmatpush3.bf16.msra.mxu1 %v486_v23 }
  0x1a   :  { %488 = vmatprep.subr.bf16.mxu1 %v523_v0  ;;  %508 = vmatpush3.bf16.msra.mxu0 %v507_v44 }
  0x1b   :  { %509 = vmatprep.subr.bf16.mxu0 %v523_v0 }
  0x1d   :  { %490 = vmatpush3.bf16.msra.mxu1 %v489_v26 }
  0x1e   :  { %491 = vmatprep.subr.bf16.mxu1 %v523_v0  ;;  %511 = vmatpush3.bf16.msra.mxu0 %v510_v47 }
  0x1f   :  { %512 = vmatprep.subr.bf16.mxu0 %v523_v0 }
  0x21   :  { %493 = vmatpush3.bf16.msra.mxu1 %v492_v29 }
  0x22   :  { %514 = vmatpush3.bf16.msra.mxu0 %v513_v50 }
  0x23   :  { %515 = vmatprep.subr.bf16.mxu0 %v523_v0  ;;  %v526_v0 = vmov 4  }
  0x24   :  { %522 = vset.pattern.permute.xlu0 %v526_v0 }
  0x26   :  { %517 = vmatpush3.bf16.msra.mxu0 %v516_v58 }
  0xda   :  { %v115_v52 = vpop.f32.mrb[0].mxu0 }
  0xdb   :  { %v116_v53 = vadd.f32 %v347_v51, %v115_v52  ;;  %v396_v54 = vpop.f32.mrb[1].mxu0 }
  0xdd   :  { %v119_v55 = vmax.f32 %v116_v53, 0.0 }
  0xdf   :  { %430 = vmatmul.mubr.f32.vlgmr.msra.gmra.mrb[0].mxu1 %v119_v55 }
 0x1b2   :  { %v209_v60 = vpop.f32.mrb[0].mxu1 }
 0x1b3   :  { %v210_v61 = vadd.f32 %v349_v59, %v209_v60  ;;  %v431_v62 = vpop.f32.mrb[1].mxu1 }
 0x1b5   :  { %v213_v63 = vmax.f32 %v210_v61, 0.0 }
 0x1b7   :  { %465 = vmatmul.mubr.f32.vlgmr.msra.gmra.mrb[2].mxu0 %v213_v63 }
 0x28a   :  { %v303_v2 = vpop.f32.mrb[2].mxu0 }
 0x28b   :  { %v304_v4 = vadd.f32 %v350_v1, %v303_v2  ;;  %v466_v5 = vpop.f32.mrb[3].mxu0 }
 0x28d   :  { %v308_v6 = vsub.f32 %v307_v3, %v304_v4 }
 0x28f   :  { %v309_v8 = vmul.f32 %v308_v6, %v308_v6 }
 0x291   :  { %v317_v10 = vmul.f32 %v351_v7, %v309_v8 }
 0x293   :  { %v325_v11 = vadd.f32 %v352_v9, %v317_v10 }
 0x295   :  { %v327_v12 = vsel %vm326_vm2, %v325_v11, 0.0 }
 0x296   :  { %328 = vadd.xlane.f32.xlu0 %v327_v12 }
 0x2ac   :  { %336 = vperm.xlu0 %522, %v304_v4  }
 0x323   :  { %v329_v15 = vpop.xlane.xlu0 %328 }
 0x32b   :  { %v337_v16 = vpop.permute.xlu0 %336 }
 0x32c   :  { %v339_v17 = vsel %vm333_vm3, %v337_v16, 0.0 }
 0x32d   :  { %v340_v18 = vsel %vm332_vm4, %v329_v15, %v339_v17 }
 0x32e   :  { %342 = vst.msk [vmem:[%s738_s10] sm:$0xff] %vm341_vm5, %v340_v18 }

</bundles_post_ra>
